<compile_context>
chip_gen: v6e
topology: v6e:2x2x1
jax: 0.10.0
libtpu: 0.0.40
codegen_flags: <defaults>
</compile_context>

<pallas_src>
import functools

import jax
import jax.numpy as jnp
from jax.experimental import pallas as pl
from jax.experimental.pallas import tpu as pltpu


def _linear_t_kernel(w_ref, xT_ref, b_ref, o_ref):
    # w_ref : (OUT, D)  VMEM   (constant index_map -> resident, fetched once)
    # xT_ref: (D,  Bt)  VMEM   (batch on the lane axis -> dense vector loads)
    # b_ref : (OUT,)    SMEM   (scalar reads, no extra VMEM DMA)
    # o_ref : (OUT, Bt) VMEM   (batch on the lane axis -> lane-dense stores)
    out_dim = o_ref.shape[0]
    acc = jnp.dot(w_ref[...], xT_ref[...], preferred_element_type=jnp.float32)

    # Fold bias in from SMEM scalars: build the per-row bias tile with a
    # broadcasted iota + selects (OUT is tiny and static, = 2).
    row = jax.lax.broadcasted_iota(jnp.int32, acc.shape, 0)
    bias = jnp.full(acc.shape, b_ref[0], dtype=jnp.float32)
    for r in range(1, out_dim):
        bias = jnp.where(row == r, b_ref[r], bias)

    o_ref[...] = (acc + bias).astype(o_ref.dtype)


@functools.partial(jax.jit, static_argnames=("block_b",))
def simple_nn_forward(x, weight, bias, *, block_b=1024):
    """y = x @ weight.T + bias   (PyTorch nn.Linear semantics).

    x:      (B, D)   float32
    weight: (OUT, D) float32   (native PyTorch layout, used untransposed)
    bias:   (OUT,)   float32
    returns (B, OUT) float32
    """
    B, D = x.shape
    OUT = weight.shape[0]

    # Feature-major activations so the batch occupies the lane axis.
    # (A production pipeline would keep activations in this layout end-to-end;
    #  here we convert at the module boundary to preserve the PyTorch
    #  (B, D) -> (B, OUT) interface.)
    xT = x.T                                            # (D, B)

    # Lane-aligned batch tile; a single full block for small B.
    bt = B if B <= block_b else block_b
    pad = (-B) % bt
    if pad:
        xT = jnp.pad(xT, ((0, 0), (0, pad)))
    Bp = B + pad
    grid = (Bp // bt,)

    yT = pl.pallas_call(
        _linear_t_kernel,
        out_shape=jax.ShapeDtypeStruct((OUT, Bp), x.dtype),
        grid=grid,
        in_specs=[
            pl.BlockSpec((OUT, D), lambda i: (0, 0)),            # weight (resident)
            pl.BlockSpec((D, bt), lambda i: (0, i)),             # x^T batch tile
            pl.BlockSpec(memory_space=pltpu.MemorySpace.SMEM),   # bias scalars
        ],
        out_specs=pl.BlockSpec((OUT, bt), lambda i: (0, i)),
        compiler_params=pltpu.CompilerParams(
            dimension_semantics=("parallel",),     # v7x: shard batch tiles over both TCs
            vmem_limit_bytes=32 * 1024 * 1024,     # fits v5e/v6e/v7x scoped VMEM budgets
        ),
    )(weight, xT, bias)

    return yT[:, :B].T                                  # back to (B, OUT)


if __name__ == "__main__":
    key = jax.random.PRNGKey(0)
    k_x, k_w, k_b = jax.random.split(key, 3)

    batch = 8
    input_dim = 32      # stand-in for X_new.shape[1]
    out_dim = 2

    # nn.Linear-style uniform(-1/sqrt(D), 1/sqrt(D)) parameter init.
    bound = 1.0 / jnp.sqrt(jnp.float32(input_dim))
    weight = jax.random.uniform(k_w, (out_dim, input_dim), jnp.float32, -bound, bound)
    bias = jax.random.uniform(k_b, (out_dim,), jnp.float32, -bound, bound)

    # Standard-normal input stands in for StandardScaler-preprocessed features
    # (the scaler is preprocessing outside the module's forward).
    x = jax.random.normal(k_x, (batch, input_dim), jnp.float32)

    out = simple_nn_forward(x, weight, bias)
    jax.block_until_ready(out)

    # Correctness check against plain JAX reference (PyTorch semantics).
    ref = x @ weight.T + bias
    assert out.shape == (batch, out_dim)
    assert jnp.allclose(out, ref, atol=1e-5, rtol=1e-5)

    print("KERNEL_OK")
</pallas_src>

<mosaic_0001>
module attributes {stable_mosaic.version = 11 : i64} {
  func.func @_linear_t_kernel(%arg0: i32, %arg1: memref<2x32xf32, #tpu.memory_space<vmem>>, %arg2: memref<32x8xf32, #tpu.memory_space<vmem>>, %arg3: memref<2xf32, #tpu.memory_space<smem>>, %arg4: memref<2x8xf32, #tpu.memory_space<vmem>>) attributes {dimension_semantics = [#tpu.dimension_semantics<parallel>], iteration_bounds = array<i64: 1>, scalar_prefetch = 0 : i64, scratch_operands = 0 : i64, tpu.core_type = #tpu.core_type<tc>, window_params = [{pipeline_mode = #tpu.pipeline_mode<synchronous>, transform_indices = @transform_0, window_bounds = array<i64: 2, 32>}, {transform_indices = @transform_1, window_bounds = array<i64: 32, 8>}, {transform_indices = @transform_2, window_bounds = array<i64: 2>}, {transform_indices = @transform_3, window_bounds = array<i64: 2, 8>}]} {
    %c0 = arith.constant 0 : index
    %c0_0 = arith.constant 0 : index
    %0 = vector.load %arg1[%c0, %c0_0] : memref<2x32xf32, #tpu.memory_space<vmem>>, vector<2x32xf32>
    %c0_1 = arith.constant 0 : index
    %c0_2 = arith.constant 0 : index
    %1 = vector.load %arg2[%c0_1, %c0_2] : memref<32x8xf32, #tpu.memory_space<vmem>>, vector<32x8xf32>
    %cst = arith.constant dense<0.000000e+00> : vector<2x8xf32>
    %2 = tpu.matmul %0, %1, %cst {dimension_numbers = #tpu.dot_dimension_numbers<[1], [0], [0], [1], [0, 0, 1, 1], [], []>} : vector<2x32xf32>, vector<32x8xf32>, vector<2x8xf32> -> vector<2x8xf32>
    %3 = tpu.iota {dimensions = array<i32: 0>} : vector<2x8xi32>
    %c0_3 = arith.constant 0 : index
    %4 = memref.load %arg3[%c0_3] : memref<2xf32, #tpu.memory_space<smem>>
    %5 = vector.broadcast %4 : f32 to vector<2x8xf32>
    %c1_i32 = arith.constant 1 : i32
    %6 = vector.broadcast %c1_i32 : i32 to vector<2x8xi32>
    %7 = arith.cmpi eq, %3, %6 : vector<2x8xi32>
    %c1 = arith.constant 1 : index
    %8 = memref.load %arg3[%c1] : memref<2xf32, #tpu.memory_space<smem>>
    %9 = vector.broadcast %8 : f32 to vector<2x8xf32>
    %10 = arith.select %7, %9, %5 : vector<2x8xi1>, vector<2x8xf32>
    %11 = arith.addf %2, %10 : vector<2x8xf32>
    %c0_4 = arith.constant 0 : index
    %c0_5 = arith.constant 0 : index
    %12 = vector.load %arg4[%c0_4, %c0_5] : memref<2x8xf32, #tpu.memory_space<vmem>>, vector<2x8xf32>
    tpu.vector_store %arg4[%c0_4, %c0_5], %11 {strides = array<i32>} : memref<2x8xf32, #tpu.memory_space<vmem>>, vector<2x8xf32>,
    return
  }
  func.func @transform_0(%arg0: i32) -> (i32, i32) {
    %c0_i32 = arith.constant 0 : i32
    %c0_i32_0 = arith.constant 0 : i32
    %c0_i32_1 = arith.constant 0 : i32
    return %c0_i32, %c0_i32_0 : i32, i32
  }
  func.func @transform_1(%arg0: i32) -> (i32, i32) {
    %c0_i32 = arith.constant 0 : i32
    %c0_i32_0 = arith.constant 0 : i32
    return %c0_i32, %arg0 : i32, i32
  }
  func.func @transform_2(%arg0: i32) -> i32 {
    %c0_i32 = arith.constant 0 : i32
    %c0_i32_0 = arith.constant 0 : i32
    return %c0_i32 : i32
  }
  func.func @transform_3(%arg0: i32) -> (i32, i32) {
    %c0_i32 = arith.constant 0 : i32
    %c0_i32_0 = arith.constant 0 : i32
    return %c0_i32, %arg0 : i32, i32
  }
}

</mosaic_0001>

<bundles_post_ra>
// kernel: simple_nn_forward.1
= control target key start
LH: loop header
LB: loop body
LE: loop exit
PB: predicated region body
PF: predicated region fallthrough
CT: control target
= control target key end

     0   :  { %8 = vsyncpa [#allocation4], 0  ;;  %s235_s0 = inlined_call_operand.vmem [shape: f32[2,32], index: 0, kind: input, shape index: {}]   ;;  %s236_s1 = inlined_call_operand.vmem [shape: f32[32,8], index: 1, kind: input, shape index: {}]   ;;  %s237_s2 = inlined_call_operand.vmem [shape: f32[2], index: 2, kind: input, shape index: {}]   ;;  %s238_s3 = inlined_call_operand.hbm [shape: f32[2,8], index: 3, kind: output, shape index: {}]  }
   0x1   :  { %9 = vsyncpa [#allocation3], 0  ;;  %s20_s14 = sshll.u32 %s237_s2, 4  ;;  %s21_s14 = int_to_ptr.vmem [resolvable:$true] %s20_s14 }
   0x2   :  { %s154_s15 = scalar_lea.vmem %s21_s14, 16  ;;  %p159_p1 = scmp.lt.s32.totalorder %s21_s14, %s21_s14 }
   0x3   :  { %p155_p0 = scmp.ne.s32.totalorder %s21_s14, %s154_s15  ;;  %p160_p2 = scmp.lt.s32.totalorder %s154_s15, %s154_s15 }
   0x5   :  { %p161_p3 = por %p160_p2, %p159_p1 }
   0x7   :  { %p162_p4 = pnand %p161_p3, %p155_p0 }
   0x9   :  { %165 = shalt.err (!%p162_p4)
}
   0xa   :  { %s190_s16 = smov [#allocation2]  }
   0xb   :  { %23 = dma.vmem_to_smem %s21_s14, 16, %s190_s16, [#allocation4]  }
   0xc   :  { %186 = dma.done.wait [#allocation4], 16  }
   0xd   :  { %187 = vsyncadd [#allocation4], 4294967280 }
   0xe   :  { %27 = sfence }
   0xf   :  { %v32_v0 = vld [vmem:[%s236_s1 + $0x18] sm:$0xff]  ;;  %v191_v1 = vmov 0.0   ;;  %v31_v2 = vld [vmem:[%s236_s1 + $0x10] sm:$0xff]  ;;  %vm192_vm0 = vmmov 0   ;;  %v30_v3 = vld [vmem:[%s236_s1 + $0x8] sm:$0xff]  ;;  %vm41_vm1 = vcmask 261120   ;;  %v33_v6 = vlaneseq }
  0x10   :  { %139 = vmatprep.subr.mxu0 %v191_v1  ;;  %147 = vmatprep.mubr.msk.f32.mxu0 %vm192_vm0, %v191_v1  ;;  %v29_v4 = vld [vmem:[%s236_s1] sm:$0xff]  ;;  %s35_s26 = sld [smem:[#allocation2]]  ;;  %s193_s28 = smov [#allocation5]   ;;  %vm115_vm3 = vcmask 58368  }
  0x11   :  { %140 = vmatpush3.msra.mxu0 %v32_v0  ;;  %v28_v5 = vld [vmem:[%s235_s0] sm:$0x3]  ;;  %s132_s27 = sld [smem:[#allocation2 + $0x1]]  ;;  %v34_v7 = vshrl.u32 %v33_v6, 7  ;;  %s123_s29 = sshll.u32 %s193_s28, 4  ;;  %s124_s29 = int_to_ptr.vmem [resolvable:$true] %s123_s29 }
  0x12   :  { %141 = vmatprep.subr.mxu0 %v191_v1  ;;  %s166_s0 = scalar_lea.vmem %s124_s29, 32  ;;  %p171_p6 = scmp.lt.s32.totalorder %s124_s29, %s124_s29 }
  0x13   :  { %142 = vmatpush3.msra.mxu0 %v31_v2  ;;  %vm37_vm2 = vcmp.eq.s32.totalorder %v34_v7, 1  ;;  %p167_p5 = scmp.ne.s32.totalorder %s124_s29, %s166_s0  ;;  %p172_p7 = scmp.lt.s32.totalorder %s166_s0, %s166_s0 }
  0x14   :  { %143 = vmatprep.subr.mxu0 %v191_v1 }
  0x15   :  { %144 = vmatpush3.msra.mxu0 %v30_v3  ;;  %p173_p8 = por %p172_p7, %p171_p6 }
  0x16   :  { %145 = vmatprep.subr.mxu0 %v191_v1  ;;  %v36_v8 = vstv %s35_s26 }
  0x17   :  { %146 = vmatpush3.msra.mxu0 %v29_v4  ;;  %v39_v9 = vstv %s132_s27  ;;  %p174_p9 = pnand %p173_p8, %p167_p5 }
  0x18   :  { %148 = vmatmul.mubr.msk.f32.vlgmr.msra.gmra.mxu0 %vm41_vm1, %v28_v5  ;;  %v40_v10 = vsel %vm37_vm2, %v39_v9, %v36_v8 }
  0xd8   :  { %v111_v11 = vpop.f32.mrf.mxu0 }
  0xd9   :  { %v112_v12 = vadd.f32 %v111_v11, %v40_v10 }
  0xda   :  { %v149_v13 = vpop.f32.mrf.mxu0 }
  0xdb   :  { %116 = vst.msk [vmem:[#allocation5] sm:$0x3] %vm115_vm3, %v112_v12 }
  0xdc   :  { %177 = shalt.err (!%p174_p9)
}
  0xdd   :  { %126 = dma.vmem_to_hbm [thread:$0]  %s124_s29, 32, %s238_s3, [#allocation3]  }
  0xde   :  { %188 = dma.done.wait [#allocation3], 32  }
  0xdf   :  { %189 = vsyncadd [#allocation3], 4294967264 }
  0xe0   :  { %130 = vsyncpa [#allocation3], 1 }
  0xe1   :  { %131 = vsyncpa [#allocation4], 1 }

</bundles_post_ra>
